<compile_context>
chip_gen: v6e
topology: v6e:2x2x1
jax: 0.10.0
libtpu: 0.0.40
codegen_flags: <defaults>
</compile_context>

<pallas_src>
import jax
import jax.numpy as jnp
from jax.experimental import pallas as pl
from jax.experimental.pallas import tpu as pltpu


def _round_up(x, m):
    return (x + m - 1) // m * m


def _tpu_budget():
    """Returns (physical VMEM bytes, scoped-vmem limit to request)."""
    cap = 64 << 20                       # conservative default = v7x physical VMEM
    try:
        cap = int(pltpu.get_tpu_info().vmem_capacity_bytes)
    except Exception:                    # best-effort query only
        pass
    return cap, min(int(cap * 0.45), 56 << 20)


def conv_relu_stats_kernel(w_ref, cols_ref, y_ref, s1_ref, s2_ref):
    """Pass 1: 3x3 conv (im2col matmul, bias folded) + ReLU + partial BN stats.

    w_ref   : (Cout, K)    bf16, K = 9*Cin + 1 (last column = conv bias)
    cols_ref: (1, K, T)    bf16 im2col tile (last row = 1 on valid lanes, 0 on pad)
    y_ref   : (1, Cout, T) bf16 post-ReLU activation tile
    s1_ref  : (1, Cout, 1) f32 per-batch running sum       (resident across spatial axis)
    s2_ref  : (1, Cout, 1) f32 per-batch running sum-of-sq (resident across spatial axis)
    """
    i = pl.program_id(1)

    # Single MXU matmul per tile: bf16 operands, f32 accumulation, DEFAULT precision.
    acc = jax.lax.dot_general(
        w_ref[...], cols_ref[0],
        dimension_numbers=(((1,), (0,)), ((), ())),
        preferred_element_type=jnp.float32)            # (Cout, T)
    acc = jnp.maximum(acc, 0.0)                        # bias already folded in
    y_ref[0] = acc.astype(y_ref.dtype)

    # Partial BatchNorm statistics (padded lanes are exactly zero -> no masking).
    s1 = jnp.sum(acc, axis=1, keepdims=True)           # (Cout, 1)
    s2 = jnp.sum(acc * acc, axis=1, keepdims=True)     # (Cout, 1)

    @pl.when(i == 0)
    def _():
        s1_ref[0] = s1
        s2_ref[0] = s2

    @pl.when(i > 0)
    def _():
        s1_ref[0] += s1
        s2_ref[0] += s2


def bn_affine_kernel(scale_ref, shift_ref, y_ref, o_ref):
    """Pass 2: fused BN affine, one mul + one add per element."""
    o_ref[0] = (y_ref[0].astype(jnp.float32) * scale_ref[...]
                + shift_ref[...]).astype(o_ref.dtype)


def layer_forward(x_nchw, w_hwio, bias, gamma, beta, eps=1e-5):
    """Forward pass matching PyTorch `Layer` (conv -> ReLU -> BN, batch stats)."""
    N, Cin, H, W = x_nchw.shape
    Cout = w_hwio.shape[-1]
    HW = H * W
    K = 9 * Cin + 1                                    # +1 = folded conv bias row

    vmem_cap, vmem_limit = _tpu_budget()
    lane_cap = 4096 if vmem_cap >= (100 << 20) else 2048   # v5e/v6e vs v7x tile budget
    T = min(lane_cap, _round_up(HW, 128))              # lane tile, multiple of 128
    S = _round_up(HW, T)                               # padded spatial length per batch
    n_tiles = S // T

    # ---- wrapper-side im2col (bf16) --------------------------------------------------
    # TODO(synk): form the 9 taps inside the kernel from the padded input (pl.ds row
    # shifts + pltpu.roll lane shifts) to remove this HBM blow-up entirely.
    x_pad = jnp.pad(x_nchw.astype(jnp.bfloat16), ((0, 0), (0, 0), (1, 1), (1, 1)))
    patches = [x_pad[:, :, kh:kh + H, kw:kw + W]
               for kh in range(3) for kw in range(3)]              # 9 x (N, Cin, H, W)
    cols = jnp.stack(patches, axis=1).reshape(N, 9 * Cin, HW)      # (N, 9*Cin, H*W)
    ones = jnp.ones((N, 1, HW), jnp.bfloat16)                      # bias row
    cols = jnp.concatenate([cols, ones], axis=1)                   # (N, K, H*W)
    if S > HW:                                                     # lane-dense padding;
        cols = jnp.pad(cols, ((0, 0), (0, 0), (0, S - HW)))        # zeros -> zero stats

    # Weight (3,3,Cin,Cout) -> (Cout, 9*Cin), k-order (kh,kw,cin); append bias column.
    w2 = w_hwio.reshape(9 * Cin, Cout).T
    w2 = jnp.concatenate([w2, bias.reshape(Cout, 1)], axis=1).astype(jnp.bfloat16)

    # ---- pass 1: conv + bias + ReLU + partial statistics -----------------------------
    flops1 = 2 * Cout * K * N * S + 4 * Cout * N * S
    bytes1 = 2 * (N * K * S + Cout * K + N * Cout * S) + 4 * (2 * N * Cout)
    y, s1, s2 = pl.pallas_call(
        conv_relu_stats_kernel,
        grid=(N, n_tiles),
        in_specs=[
            pl.BlockSpec((Cout, K), lambda n, i: (0, 0)),        # weights (resident)
            pl.BlockSpec((1, K, T), lambda n, i: (n, 0, i)),     # im2col tile
        ],
        out_specs=(
            pl.BlockSpec((1, Cout, T), lambda n, i: (n, 0, i)),  # activation tile
            pl.BlockSpec((1, Cout, 1), lambda n, i: (n, 0, 0)),  # per-batch sum
            pl.BlockSpec((1, Cout, 1), lambda n, i: (n, 0, 0)),  # per-batch sum of sq
        ),
        out_shape=(
            jax.ShapeDtypeStruct((N, Cout, S), jnp.bfloat16),
            jax.ShapeDtypeStruct((N, Cout, 1), jnp.float32),
            jax.ShapeDtypeStruct((N, Cout, 1), jnp.float32),
        ),
        compiler_params=pltpu.CompilerParams(
            dimension_semantics=("parallel", "arbitrary"),
            vmem_limit_bytes=vmem_limit),
        cost_estimate=pl.CostEstimate(flops=flops1, transcendentals=0,
                                      bytes_accessed=bytes1),
    )(w2, cols)

    # ---- finalize BN statistics (tiny: N*Cout scalars, plain JAX) --------------------
    cnt = float(N * HW)                                # padded lanes contribute exact 0
    mean = jnp.sum(s1[:, :, 0], axis=0) / cnt                         # (Cout,)
    var = jnp.maximum(jnp.sum(s2[:, :, 0], axis=0) / cnt - mean * mean, 0.0)
    scale = (gamma * jax.lax.rsqrt(var + eps)).astype(jnp.float32)    # (Cout,)
    shift = (beta - mean * scale).astype(jnp.float32)
    scale = scale.reshape(Cout, 1)
    shift = shift.reshape(Cout, 1)

    # ---- pass 2: fused affine y*scale + shift, same tiling ---------------------------
    bytes2 = 2 * N * Cout * S + 4 * (N * Cout * S + 2 * Cout)
    out = pl.pallas_call(
        bn_affine_kernel,
        grid=(N, n_tiles),
        in_specs=[
            pl.BlockSpec((Cout, 1), lambda n, i: (0, 0)),
            pl.BlockSpec((Cout, 1), lambda n, i: (0, 0)),
            pl.BlockSpec((1, Cout, T), lambda n, i: (n, 0, i)),
        ],
        out_specs=pl.BlockSpec((1, Cout, T), lambda n, i: (n, 0, i)),
        out_shape=jax.ShapeDtypeStruct((N, Cout, S), jnp.float32),
        compiler_params=pltpu.CompilerParams(
            dimension_semantics=("parallel", "parallel"),
            vmem_limit_bytes=vmem_limit),
        cost_estimate=pl.CostEstimate(flops=2 * N * Cout * S, transcendentals=0,
                                      bytes_accessed=bytes2),
    )(scale, shift, y)

    # (N, Cout, S) is NCHW-ordered with lane padding; slice + reshape back to NCHW.
    return out[:, :, :HW].reshape(N, Cout, H, W)


def layer_reference(x, w_hwio, bias, gamma, beta, eps=1e-5):
    """Pure-JAX f32 reference (conv -> ReLU -> BN with batch stats, biased var)."""
    y = jax.lax.conv_general_dilated(
        x, w_hwio, window_strides=(1, 1), padding="SAME",
        dimension_numbers=("NCHW", "HWIO", "NCHW"),
        precision=jax.lax.Precision.HIGHEST)
    y = y + bias.reshape(1, -1, 1, 1)
    y = jnp.maximum(y, 0.0)
    mean = jnp.mean(y, axis=(0, 2, 3), keepdims=True)
    var = jnp.var(y, axis=(0, 2, 3), keepdims=True)    # biased, like BN training mode
    return (y - mean) * jax.lax.rsqrt(var + eps) * gamma.reshape(1, -1, 1, 1) \
        + beta.reshape(1, -1, 1, 1)


if __name__ == "__main__":
    key = jax.random.PRNGKey(0)
    N, Cin, H, W, Cout = 2, 4, 16, 16, 8
    k1, k2, k3, k4, k5 = jax.random.split(key, 5)

    # Deterministic synthetic parameters (shapes from nn.Conv2d(Cin,Cout,3) + BatchNorm2d(Cout)).
    x = jax.random.normal(k1, (N, Cin, H, W), jnp.float32)
    w = 0.1 * jax.random.normal(k2, (3, 3, Cin, Cout), jnp.float32)   # HWIO conv weight
    b = 0.1 * jax.random.normal(k3, (Cout,), jnp.float32)             # conv bias
    gamma = 1.0 + 0.1 * jax.random.normal(k4, (Cout,), jnp.float32)   # BN weight
    beta = 0.1 * jax.random.normal(k5, (Cout,), jnp.float32)          # BN bias

    fwd = jax.jit(layer_forward)
    y = fwd(x, w, b, gamma, beta)
    y = jax.block_until_ready(y)
    assert y.shape == (N, Cout, H, W)

    # bf16 conv operands + bf16 intermediate activation vs f32 HIGHEST reference.
    y_ref = layer_reference(x, w, b, gamma, beta)
    max_err = float(jnp.max(jnp.abs(y - y_ref)))
    assert max_err < 5e-2, f"mismatch vs reference: {max_err}"
    print("KERNEL_OK")
</pallas_src>

<mosaic_0001>
module attributes {stable_mosaic.version = 11 : i64} {
  func.func @conv_relu_stats_kernel(%arg0: i32, %arg1: i32, %arg2: memref<8x37xbf16, #tpu.memory_space<vmem>>, %arg3: memref<1x37x256xbf16, #tpu.memory_space<vmem>>, %arg4: memref<1x8x256xbf16, #tpu.memory_space<vmem>>, %arg5: memref<1x8x1xf32, #tpu.memory_space<vmem>>, %arg6: memref<1x8x1xf32, #tpu.memory_space<vmem>>) attributes {dimension_semantics = [#tpu.dimension_semantics<parallel>, #tpu.dimension_semantics<arbitrary>], iteration_bounds = array<i64: 2, 1>, scalar_prefetch = 0 : i64, scratch_operands = 0 : i64, tpu.core_type = #tpu.core_type<tc>, window_params = [{pipeline_mode = #tpu.pipeline_mode<synchronous>, transform_indices = @transform_0, window_bounds = array<i64: 8, 37>}, {transform_indices = @transform_1, window_bounds = array<i64: 1, 37, 256>}, {transform_indices = @transform_2, window_bounds = array<i64: 1, 8, 256>}, {transform_indices = @transform_3, window_bounds = array<i64: 1, 8, 1>}, {transform_indices = @transform_4, window_bounds = array<i64: 1, 8, 1>}]} {
    %c0 = arith.constant 0 : index
    %c0_0 = arith.constant 0 : index
    %0 = vector.load %arg2[%c0, %c0_0] : memref<8x37xbf16, #tpu.memory_space<vmem>>, vector<8x37xbf16>
    %c0_1 = arith.constant 0 : index
    %c0_2 = arith.constant 0 : index
    %c0_3 = arith.constant 0 : index
    %1 = vector.load %arg3[%c0_1, %c0_2, %c0_3] : memref<1x37x256xbf16, #tpu.memory_space<vmem>>, vector<1x37x256xbf16>
    %2 = vector.shape_cast %1 : vector<1x37x256xbf16> to vector<37x256xbf16>
    %cst = arith.constant dense<0.000000e+00> : vector<8x256xf32>
    %3 = tpu.matmul %0, %2, %cst {dimension_numbers = #tpu.dot_dimension_numbers<[1], [0], [0], [1], [0, 0, 1, 1], [], []>} : vector<8x37xbf16>, vector<37x256xbf16>, vector<8x256xf32> -> vector<8x256xf32>
    %cst_4 = arith.constant 0.000000e+00 : f32
    %4 = vector.broadcast %cst_4 : f32 to vector<8x256xf32>
    %5 = arith.maximumf %3, %4 : vector<8x256xf32>
    %6 = arith.truncf %5 : vector<8x256xf32> to vector<8x256xbf16>
    %c0_5 = arith.constant 0 : index
    %c0_6 = arith.constant 0 : index
    %c0_7 = arith.constant 0 : index
    %7 = vector.load %arg4[%c0_5, %c0_6, %c0_7] : memref<1x8x256xbf16, #tpu.memory_space<vmem>>, vector<1x8x256xbf16>
    %8 = vector.shape_cast %7 : vector<1x8x256xbf16> to vector<8x256xbf16>
    %9 = vector.shape_cast %6 : vector<8x256xbf16> to vector<1x8x256xbf16>
    tpu.vector_store %arg4[%c0_5, %c0_6, %c0_7], %9 {strides = array<i32>} : memref<1x8x256xbf16, #tpu.memory_space<vmem>>, vector<1x8x256xbf16>,
    %cst_8 = arith.constant dense<0.000000e+00> : vector<8xf32>
    %10 = vector.multi_reduction <add>, %5, %cst_8 [1] : vector<8x256xf32> to vector<8xf32>
    %11 = vector.shape_cast %10 : vector<8xf32> to vector<8x1xf32>
    %12 = arith.mulf %5, %5 : vector<8x256xf32>
    %cst_9 = arith.constant dense<0.000000e+00> : vector<8xf32>
    %13 = vector.multi_reduction <add>, %12, %cst_9 [1] : vector<8x256xf32> to vector<8xf32>
    %14 = vector.shape_cast %13 : vector<8xf32> to vector<8x1xf32>
    %c0_i32 = arith.constant 0 : i32
    %15 = arith.cmpi eq, %arg1, %c0_i32 : i32
    %16 = arith.extui %15 : i1 to i32
    %c0_i32_10 = arith.constant 0 : i32
    %17 = arith.cmpi ne, %16, %c0_i32_10 : i32
    scf.if %17 {
      %c0_13 = arith.constant 0 : index
      %c0_14 = arith.constant 0 : index
      %c0_15 = arith.constant 0 : index
      %21 = vector.load %arg5[%c0_13, %c0_14, %c0_15] : memref<1x8x1xf32, #tpu.memory_space<vmem>>, vector<1x8x1xf32>
      %22 = vector.shape_cast %21 : vector<1x8x1xf32> to vector<8x1xf32>
      %23 = vector.shape_cast %11 : vector<8x1xf32> to vector<1x8x1xf32>
      tpu.vector_store %arg5[%c0_13, %c0_14, %c0_15], %23 {strides = array<i32>} : memref<1x8x1xf32, #tpu.memory_space<vmem>>, vector<1x8x1xf32>,
      %c0_16 = arith.constant 0 : index
      %c0_17 = arith.constant 0 : index
      %c0_18 = arith.constant 0 : index
      %24 = vector.load %arg6[%c0_16, %c0_17, %c0_18] : memref<1x8x1xf32, #tpu.memory_space<vmem>>, vector<1x8x1xf32>
      %25 = vector.shape_cast %24 : vector<1x8x1xf32> to vector<8x1xf32>
      %26 = vector.shape_cast %14 : vector<8x1xf32> to vector<1x8x1xf32>
      tpu.vector_store %arg6[%c0_16, %c0_17, %c0_18], %26 {strides = array<i32>} : memref<1x8x1xf32, #tpu.memory_space<vmem>>, vector<1x8x1xf32>,
    } else {
    }
    %c0_i32_11 = arith.constant 0 : i32
    %18 = arith.cmpi sgt, %arg1, %c0_i32_11 : i32
    %19 = arith.extui %18 : i1 to i32
    %c0_i32_12 = arith.constant 0 : i32
    %20 = arith.cmpi ne, %19, %c0_i32_12 : i32
    scf.if %20 {
      %c0_13 = arith.constant 0 : index
      %c0_14 = arith.constant 0 : index
      %c0_15 = arith.constant 0 : index
      %21 = vector.load %arg5[%c0_13, %c0_14, %c0_15] : memref<1x8x1xf32, #tpu.memory_space<vmem>>, vector<1x8x1xf32>
      %22 = vector.shape_cast %21 : vector<1x8x1xf32> to vector<8x1xf32>
      %23 = arith.addf %22, %11 : vector<8x1xf32>
      %c0_16 = arith.constant 0 : index
      %c0_17 = arith.constant 0 : index
      %c0_18 = arith.constant 0 : index
      %24 = vector.load %arg5[%c0_16, %c0_17, %c0_18] : memref<1x8x1xf32, #tpu.memory_space<vmem>>, vector<1x8x1xf32>
      %25 = vector.shape_cast %24 : vector<1x8x1xf32> to vector<8x1xf32>
      %26 = vector.shape_cast %23 : vector<8x1xf32> to vector<1x8x1xf32>
      tpu.vector_store %arg5[%c0_16, %c0_17, %c0_18], %26 {strides = array<i32>} : memref<1x8x1xf32, #tpu.memory_space<vmem>>, vector<1x8x1xf32>,
      %c0_19 = arith.constant 0 : index
      %c0_20 = arith.constant 0 : index
      %c0_21 = arith.constant 0 : index
      %27 = vector.load %arg6[%c0_19, %c0_20, %c0_21] : memref<1x8x1xf32, #tpu.memory_space<vmem>>, vector<1x8x1xf32>
      %28 = vector.shape_cast %27 : vector<1x8x1xf32> to vector<8x1xf32>
      %29 = arith.addf %28, %14 : vector<8x1xf32>
      %c0_22 = arith.constant 0 : index
      %c0_23 = arith.constant 0 : index
      %c0_24 = arith.constant 0 : index
      %30 = vector.load %arg6[%c0_22, %c0_23, %c0_24] : memref<1x8x1xf32, #tpu.memory_space<vmem>>, vector<1x8x1xf32>
      %31 = vector.shape_cast %30 : vector<1x8x1xf32> to vector<8x1xf32>
      %32 = vector.shape_cast %29 : vector<8x1xf32> to vector<1x8x1xf32>
      tpu.vector_store %arg6[%c0_22, %c0_23, %c0_24], %32 {strides = array<i32>} : memref<1x8x1xf32, #tpu.memory_space<vmem>>, vector<1x8x1xf32>,
    } else {
    }
    return
  }
  func.func @transform_0(%arg0: i32, %arg1: i32) -> (i32, i32) {
    %c0_i32 = arith.constant 0 : i32
    %c0_i32_0 = arith.constant 0 : i32
    %c0_i32_1 = arith.constant 0 : i32
    return %c0_i32, %c0_i32_0 : i32, i32
  }
  func.func @transform_1(%arg0: i32, %arg1: i32) -> (i32, i32, i32) {
    %c0_i32 = arith.constant 0 : i32
    %c0_i32_0 = arith.constant 0 : i32
    return %arg0, %c0_i32, %arg1 : i32, i32, i32
  }
  func.func @transform_2(%arg0: i32, %arg1: i32) -> (i32, i32, i32) {
    %c0_i32 = arith.constant 0 : i32
    %c0_i32_0 = arith.constant 0 : i32
    return %arg0, %c0_i32, %arg1 : i32, i32, i32
  }
  func.func @transform_3(%arg0: i32, %arg1: i32) -> (i32, i32, i32) {
    %c0_i32 = arith.constant 0 : i32
    %c0_i32_0 = arith.constant 0 : i32
    %c0_i32_1 = arith.constant 0 : i32
    return %arg0, %c0_i32, %c0_i32_0 : i32, i32, i32
  }
  func.func @transform_4(%arg0: i32, %arg1: i32) -> (i32, i32, i32) {
    %c0_i32 = arith.constant 0 : i32
    %c0_i32_0 = arith.constant 0 : i32
    %c0_i32_1 = arith.constant 0 : i32
    return %arg0, %c0_i32, %c0_i32_0 : i32, i32, i32
  }
}

module attributes {stable_mosaic.version = 11 : i64} {
  func.func @bn_affine_kernel(%arg0: i32, %arg1: i32, %arg2: memref<8x1xf32, #tpu.memory_space<vmem>>, %arg3: memref<8x1xf32, #tpu.memory_space<vmem>>, %arg4: memref<1x8x256xbf16, #tpu.memory_space<vmem>>, %arg5: memref<1x8x256xf32, #tpu.memory_space<vmem>>) attributes {dimension_semantics = [#tpu.dimension_semantics<parallel>, #tpu.dimension_semantics<parallel>], iteration_bounds = array<i64: 2, 1>, scalar_prefetch = 0 : i64, scratch_operands = 0 : i64, tpu.core_type = #tpu.core_type<tc>, window_params = [{pipeline_mode = #tpu.pipeline_mode<synchronous>, transform_indices = @transform_0, window_bounds = array<i64: 8, 1>}, {pipeline_mode = #tpu.pipeline_mode<synchronous>, transform_indices = @transform_1, window_bounds = array<i64: 8, 1>}, {transform_indices = @transform_2, window_bounds = array<i64: 1, 8, 256>}, {transform_indices = @transform_3, window_bounds = array<i64: 1, 8, 256>}]} {
    %c0 = arith.constant 0 : index
    %c0_0 = arith.constant 0 : index
    %c0_1 = arith.constant 0 : index
    %0 = vector.load %arg4[%c0, %c0_0, %c0_1] : memref<1x8x256xbf16, #tpu.memory_space<vmem>>, vector<1x8x256xbf16>
    %1 = vector.shape_cast %0 : vector<1x8x256xbf16> to vector<8x256xbf16>
    %2 = arith.extf %1 : vector<8x256xbf16> to vector<8x256xf32>
    %c0_2 = arith.constant 0 : index
    %c0_3 = arith.constant 0 : index
    %3 = vector.load %arg2[%c0_2, %c0_3] : memref<8x1xf32, #tpu.memory_space<vmem>>, vector<8x1xf32>
    %4 = vector.broadcast %3 : vector<8x1xf32> to vector<8x256xf32>
    %5 = arith.mulf %2, %4 : vector<8x256xf32>
    %c0_4 = arith.constant 0 : index
    %c0_5 = arith.constant 0 : index
    %6 = vector.load %arg3[%c0_4, %c0_5] : memref<8x1xf32, #tpu.memory_space<vmem>>, vector<8x1xf32>
    %7 = vector.broadcast %6 : vector<8x1xf32> to vector<8x256xf32>
    %8 = arith.addf %5, %7 : vector<8x256xf32>
    %c0_6 = arith.constant 0 : index
    %c0_7 = arith.constant 0 : index
    %c0_8 = arith.constant 0 : index
    %9 = vector.load %arg5[%c0_6, %c0_7, %c0_8] : memref<1x8x256xf32, #tpu.memory_space<vmem>>, vector<1x8x256xf32>
    %10 = vector.shape_cast %9 : vector<1x8x256xf32> to vector<8x256xf32>
    %11 = vector.shape_cast %8 : vector<8x256xf32> to vector<1x8x256xf32>
    tpu.vector_store %arg5[%c0_6, %c0_7, %c0_8], %11 {strides = array<i32>} : memref<1x8x256xf32, #tpu.memory_space<vmem>>, vector<1x8x256xf32>,
    return
  }
  func.func @transform_0(%arg0: i32, %arg1: i32) -> (i32, i32) {
    %c0_i32 = arith.constant 0 : i32
    %c0_i32_0 = arith.constant 0 : i32
    %c0_i32_1 = arith.constant 0 : i32
    return %c0_i32, %c0_i32_0 : i32, i32
  }
  func.func @transform_1(%arg0: i32, %arg1: i32) -> (i32, i32) {
    %c0_i32 = arith.constant 0 : i32
    %c0_i32_0 = arith.constant 0 : i32
    %c0_i32_1 = arith.constant 0 : i32
    return %c0_i32, %c0_i32_0 : i32, i32
  }
  func.func @transform_2(%arg0: i32, %arg1: i32) -> (i32, i32, i32) {
    %c0_i32 = arith.constant 0 : i32
    %c0_i32_0 = arith.constant 0 : i32
    return %arg0, %c0_i32, %arg1 : i32, i32, i32
  }
  func.func @transform_3(%arg0: i32, %arg1: i32) -> (i32, i32, i32) {
    %c0_i32 = arith.constant 0 : i32
    %c0_i32_0 = arith.constant 0 : i32
    return %arg0, %c0_i32, %arg1 : i32, i32, i32
  }
}

</mosaic_0001>

<bundles_post_ra>
// kernel: layer_forward.2
= control target key start
LH: loop header
LB: loop body
LE: loop exit
PB: predicated region body
PF: predicated region fallthrough
CT: control target
= control target key end

     0   :  { %s639_s15 = smov 0   ;;  %s641_s16 = smov 0   ;;  %s681_s0 = inlined_call_operand.vmem [shape: bf16[8,37], index: 0, kind: input, shape index: {}]   ;;  %s682_s1 = inlined_call_operand.vmem [shape: bf16[2,37,256], index: 1, kind: input, shape index: {}]   ;;  %s683_s2 = inlined_call_operand.vmem [shape: bf16[2,8,256], index: 2, kind: output, shape index: {0}]   ;;  %s684_s3 = inlined_call_operand.vmem [shape: f32[2,8,1], index: 3, kind: output, shape index: {1}]   ;;  %s685_s4 = inlined_call_operand.vmem [shape: f32[2,8,1], index: 4, kind: output, shape index: {2}]  }
   0x1   :  { %s643_s17 = smov 0  }
   0x2 LB: > { %s27_s18 = sadd.s32 1, %s606_s16  ;;  %p535_p0 = scmp.ge.s32.totalorder %s610_s17, 1  ;;  %s610_s17 = sphi %s643_s17, %s15_s17   ;;  %s606_s16 = sphi %s641_s16, %s687_s16   ;;  %s602_s15 = sphi %s639_s15, %s686_s15  }
   0x3   : > { %p29_p1 = scmp.ge.s32.totalorder %s27_s18, 2  ;;  %p188_p2 = scmp.lt.s32.totalorder %s610_s17, 3 }
   0x5   : > { %s689_s18 = smov (%p29_p1, %s27_s18), 0  ;;  %p189_p3 = pnand %p535_p0, %p188_p2 }
   0x6   : > { %p231_p4 = scmp.lt.s32.totalorder (!%p189_p3), %s602_s15, 1 }
   0x7   : > { %192 = sbr.rel (%p189_p3) target bundleno = 375 (0x177), region = 28 }
   0xc   : > { %vm294_vm0 = vcmask 1041408   ;;  %v612_v0 = vmov 0   ;;  %s691_s15 = smov (!%p231_p4, %s602_s15), 1  ;;  %vm295_vm1 = vcmask 1042432   ;;  %v613_v1 = vmov 65535  }
   0xd   : > { %336 = vmatprep.mubr.bf16.mxu0 %v612_v0  ;;  %s553_s19 = smul.u32 40, %s691_s15  ;;  %v296_v2 = vsel %vm294_vm0, 4294967295, %v613_v1  ;;  %v259_v13 = vld [vmem:[%s681_s0] sm:$0xf]  ;;  %vm290_vm2 = vcmask 302080   ;;  %s551_s25 = sshll.u32 %s691_s15, 3 }
   0xe   : > { %v297_v4 = vsel %vm295_vm1, %v296_v2, 0  ;;  %s248_s28 = scalar_lea.vmem %s683_s2, %s551_s25  ;;  %s253_s5 = scalar_lea.vmem %s684_s3, %s551_s25  ;;  %vm368_vm3 = vcmask 7168  }
   0xf   : > { %s238_s22 = scalar_lea.vmem %s682_s1, %s553_s19  ;;  %s257_s8 = scalar_lea.vmem %s685_s4, %s551_s25 }
  0x10   : > { %v264_v3 = vld [vmem:[%s238_s22 + $0x20] sm:$0x77]  ;;  %v582_v9 = vld [vmem:[%s238_s22 + $0x14] ss:$8 sps:$4 sm:$0xff]   ;;  %v584_v10 = vld [vmem:[%s238_s22 + $0x10] ss:$8 sps:$4 sm:$0xff]  }
  0x11   : > { %v546_v5 = vcombine.high %v264_v3, %v264_v3  ;;  %v545_v6 = vcombine.low %v264_v3, %v264_v3  ;;  %v585_v11 = vld [vmem:[%s238_s22 + $0x4] ss:$8 sps:$4 sm:$0xff]   ;;  %v587_v12 = vld [vmem:[%s238_s22] ss:$8 sps:$4 sm:$0xff]  }
  0x13   : > { %v302_v7 = vand.u32 %v546_v5, %v297_v4  ;;  %v299_v8 = vand.u32 %v545_v6, %v297_v4 }
  0x15   : > { %314 = vmatprep.subr.bf16.mxu0 %v302_v7 }
  0x16   : > { %315 = vmatpush1.bf16.msra.mxu0 %v299_v8 }
  0x17   : > { %316 = vmatprep.subr.bf16.mxu0 %v582_v9 }
  0x1a   : > { %317 = vmatpush1.bf16.msra.mxu0 %v584_v10 }
  0x1b   : > { %318 = vmatprep.subr.bf16.mxu0 %v585_v11 }
  0x1e   : > { %319 = vmatpush1.bf16.msra.mxu0 %v587_v12 }
  0x21   : > { %547 = vmatmul.mubr.msk.bf16.vlgmr.msra.gmra.mxu0 %vm290_vm2, %v259_v13 }
  0xe1   : > { %v338_v14 = vpop.f32.mrf.mxu0 }
  0xe2   : > { %v345_v16 = vmax.f32 %v338_v14, 0.0 }
  0xe3   : > { %v340_v15 = vpop.f32.mrf.mxu0 }
  0xe4   : > { %v346_v17 = vmax.f32 %v340_v15, 0.0  ;;  %v359_v23 = vmul.f32 %v345_v16, %v345_v16 }
  0xe5   : > { %v342_v18 = vpop.f32.mrf.mxu0 }
  0xe6   : > { %v552_v19 = vpack.c.bf16 %v346_v17, %v345_v16  ;;  %v356_v20 = vadd.f32 %v346_v17, %v345_v16  ;;  %v360_v21 = vmul.f32 %v346_v17, %v346_v17 }
  0xe7   : > { %v343_v22 = vpop.f32.mrf.mxu0 }
  0xe8   : > { %357 = vadd.xlane.f32.xlu0 %v356_v20  ;;  %355 = vst [vmem:[%s248_s28] sm:$0xff] %v552_v19  ;;  %v361_v24 = vadd.f32 %v360_v21, %v359_v23 }
  0xec   : > { %362 = vadd.xlane.f32.xlu0 %v361_v24 }
 0x171   : > { %v358_v25 = vpop.xlane.xlu0 %357 }
 0x172   : > { %369 = vst.msk [vmem:[%s253_s5] sm:$0xff] %vm368_vm3, %v358_v25 }
 0x175   : > { %v363_v26 = vpop.xlane.xlu0 %362 }
 0x176   : > { %370 = vst.msk [vmem:[%s257_s8] sm:$0xff] %vm368_vm3, %v363_v26 }
 0x177 PF: > { %s15_s17 = sadd.s32 1, %s610_s17   ;;  %s686_s15 = smov %s606_s16 }
 0x178   : > { %p12_p5 = scmp.ge.s32.totalorder %s15_s17, 4   ;;  %s687_s16 = smov %s689_s18 }
 0x17a   :  { %14 = sbr.rel (!%p12_p5) target bundleno = 2 (0x2), region = 90 }

// kernel: layer_forward.3
= control target key start
LH: loop header
LB: loop body
LE: loop exit
PB: predicated region body
PF: predicated region fallthrough
CT: control target
= control target key end

     0   :  { %s402_s12 = smov 0   ;;  %s404_s13 = smov 0   ;;  %s441_s0 = inlined_call_operand.vmem [shape: f32[8,1], index: 0, kind: input, shape index: {}]   ;;  %s442_s1 = inlined_call_operand.vmem [shape: f32[8,1], index: 1, kind: input, shape index: {}]   ;;  %s443_s2 = inlined_call_operand.vmem [shape: bf16[2,8,256], index: 2, kind: input, shape index: {}]   ;;  %s444_s3 = inlined_call_operand.vmem [shape: f32[2,8,256], index: 3, kind: output, shape index: {}]  }
   0x1   :  { %s406_s14 = smov 0  }
   0x2 LB: > { %s25_s15 = sadd.s32 1, %s375_s13  ;;  %p322_p0 = scmp.ge.s32.totalorder %s379_s14, 1  ;;  %s379_s14 = sphi %s406_s14, %s13_s14   ;;  %s375_s13 = sphi %s404_s13, %s446_s13   ;;  %s371_s12 = sphi %s402_s12, %s445_s12  }
   0x3   : > { %p27_p1 = scmp.ge.s32.totalorder %s25_s15, 2  ;;  %p158_p2 = scmp.lt.s32.totalorder %s379_s14, 3 }
   0x5   : > { %s448_s15 = smov (%p27_p1, %s25_s15), 0  ;;  %p159_p3 = pnand %p322_p0, %p158_p2 }
   0x6   : > { %p191_p4 = scmp.lt.s32.totalorder (!%p159_p3), %s371_s12, 1 }
   0x7   : > { %162 = sbr.rel (%p159_p3) target bundleno = 145 (0x91), region = 32 }
   0xc   : > { %v213_v0 = vld [vmem:[%s441_s0] sm:$0xff]  ;;  %v381_v1 = vmov 0   ;;  %s450_s12 = smov (!%p191_p4, %s371_s12), 1 }
   0xd   : > { %356 = vset.pattern.permute.xlu0 %v381_v1  ;;  %v221_v2 = vld [vmem:[%s442_s1] sm:$0xff]  ;;  %s329_s20 = sshll.u32 %s450_s12, 3  ;;  %s330_s24 = sshll.u32 %s450_s12, 4 }
   0xe   : > { %216 = vperm.xlu0 %356, %v213_v0   ;;  %s198_s23 = scalar_lea.vmem %s443_s2, %s329_s20  ;;  %s208_s27 = scalar_lea.vmem %s444_s3, %s330_s24 }
   0xf   : > { %v210_v3 = vld [vmem:[%s198_s23] sm:$0xff] }
  0x10   : > { %v211_v4 = vunpack.c.l.bf16 %v210_v3  ;;  %v212_v5 = vunpack.c.h.bf16 %v210_v3 }
  0x12   : > { %224 = vperm.xlu0 %356, %v221_v2  }
  0x89   : > { %v217_v6 = vpop.permute.xlu0 %216 }
  0x8a   : > { %v219_v7 = vmul.f32 %v217_v6, %v211_v4  ;;  %v220_v8 = vmul.f32 %v217_v6, %v212_v5 }
  0x8d   : > { %v225_v9 = vpop.permute.xlu0 %224 }
  0x8e   : > { %v227_v10 = vadd.f32 %v225_v9, %v219_v7  ;;  %v228_v11 = vadd.f32 %v225_v9, %v220_v8 }
  0x90   : > { %229 = vst [vmem:[%s208_s27] sm:$0xff] %v227_v10  ;;  %230 = vst [vmem:[%s208_s27 + $0x8] sm:$0xff] %v228_v11 }
  0x91 PF: > { %s13_s14 = sadd.s32 1, %s379_s14   ;;  %s445_s12 = smov %s375_s13 }
  0x92   : > { %p10_p5 = scmp.ge.s32.totalorder %s13_s14, 4   ;;  %s446_s13 = smov %s448_s15 }
  0x94   :  { %12 = sbr.rel (!%p10_p5) target bundleno = 2 (0x2), region = 62 }

</bundles_post_ra>
